<compile_context>
chip_gen: v7x
topology: tpu7x:2x2x1
jax: 0.10.0
libtpu: 0.0.40
codegen_flags: <defaults>
</compile_context>

<pallas_src>
import functools

import jax
import jax.numpy as jnp
from jax.experimental import pallas as pl
from jax.experimental.pallas import tpu as pltpu


def _mean_kernel(x_ref, o_ref, acc_ref, *, inv_s):
    # x_ref:   (BT, TS, Dp) input tile
    # o_ref:   (BT, 1,  Dp) output tile (same block for every k -> resident)
    # acc_ref: (BT, 1,  Dp) f32 accumulator scratch
    k = pl.program_id(1)

    @pl.when(k == 0)
    def _init():
        acc_ref[...] = jnp.zeros_like(acc_ref)

    acc_ref[...] += jnp.sum(
        x_ref[...].astype(jnp.float32), axis=1, keepdims=True
    )

    @pl.when(k == pl.num_programs(1) - 1)
    def _finalize():
        o_ref[...] = (acc_ref[...] * inv_s).astype(o_ref.dtype)


def _round_up(x, m):
    return ((x + m - 1) // m) * m


def _pick_tiles(B, S, d_pad, dtype_bytes, target_bytes):
    # Sublane packing: 8 rows for 32-bit, 16 for bf16, 32 for 8-bit dtypes.
    sub = max(8, 32 // max(dtype_bytes, 1))
    # Sequence tile sized so one input buffer is ~target_bytes.
    ts = target_bytes // max(d_pad * dtype_bytes, 1)
    ts = max(sub, (ts // sub) * sub)
    ts = min(ts, _round_up(S, sub))
    s_pad = _round_up(S, ts)
    # If the whole padded sequence fits in one tile, fold batches into the block
    # so DMAs stay large and per-step overhead is amortised.
    bt = 1
    if ts == s_pad:
        per_batch = ts * d_pad * dtype_bytes
        max_bt = max(1, target_bytes // max(per_batch, 1))
        for cand in range(min(B, max_bt), 0, -1):
            if B % cand == 0:
                bt = cand
                break
    return bt, ts, s_pad


def mean_layer(x, *, target_bytes=2 << 20):
    """Pallas equivalent of meanLayer.forward: mean over dim=1, keepdims=True."""
    B, S, D = x.shape
    dtype_bytes = jnp.dtype(x.dtype).itemsize

    # Lane-dense output: pad D up to a multiple of 128 (padded cols sliced off).
    d_pad = _round_up(D, 128)
    bt, ts, s_pad = _pick_tiles(B, S, d_pad, dtype_bytes, target_bytes)

    xp = x
    if s_pad != S or d_pad != D:
        xp = jnp.pad(x, ((0, 0), (0, s_pad - S), (0, d_pad - D)))

    grid = (B // bt, s_pad // ts)
    kernel = functools.partial(_mean_kernel, inv_s=float(1.0 / S))

    out = pl.pallas_call(
        kernel,
        out_shape=jax.ShapeDtypeStruct((B, 1, d_pad), x.dtype),
        grid=grid,
        in_specs=[pl.BlockSpec((bt, ts, d_pad), lambda b, k: (b, k, 0))],
        out_specs=pl.BlockSpec((bt, 1, d_pad), lambda b, k: (b, 0, 0)),
        scratch_shapes=[pltpu.VMEM((bt, 1, d_pad), jnp.float32)],
        compiler_params=pltpu.CompilerParams(
            dimension_semantics=("parallel", "arbitrary")
        ),
    )(xp)

    if d_pad != D:
        out = out[:, :, :D]
    return out


if __name__ == "__main__":
    key = jax.random.PRNGKey(0)

    # Primary test shape (matches the module's (B, S, D) usage).
    B, S, D = 2, 8, 128
    x = jax.random.normal(key, (B, S, D), dtype=jnp.float32)
    out = mean_layer(x)
    jax.block_until_ready(out)
    ref = jnp.mean(x, axis=1, keepdims=True)
    assert out.shape == (B, 1, D), out.shape
    assert jnp.allclose(out, ref, atol=1e-5, rtol=1e-5)

    # Ragged shape: exercises S / D zero-padding paths.
    k2 = jax.random.PRNGKey(1)
    x2 = jax.random.normal(k2, (3, 37, 96), dtype=jnp.float32)
    out2 = mean_layer(x2)
    jax.block_until_ready(out2)
    ref2 = jnp.mean(x2, axis=1, keepdims=True)
    assert out2.shape == (3, 1, 96), out2.shape
    assert jnp.allclose(out2, ref2, atol=1e-5, rtol=1e-5)

    # Tiny target_bytes forces multiple reduction tiles -> exercises the
    # init/accumulate/finalize accumulator path across grid steps.
    k3 = jax.random.PRNGKey(2)
    x3 = jax.random.normal(k3, (2, 24, 128), dtype=jnp.float32)
    out3 = mean_layer(x3, target_bytes=4096)
    jax.block_until_ready(out3)
    ref3 = jnp.mean(x3, axis=1, keepdims=True)
    assert out3.shape == (2, 1, 128), out3.shape
    assert jnp.allclose(out3, ref3, atol=1e-5, rtol=1e-5)

    print("KERNEL_OK")
</pallas_src>

<mosaic_0001>
module attributes {stable_mosaic.version = 11 : i64} {
  func.func @_mean_kernel(%arg0: i32, %arg1: i32, %arg2: memref<2x8x128xf32, #tpu.memory_space<vmem>>, %arg3: memref<2x1x128xf32, #tpu.memory_space<vmem>>, %arg4: memref<2x1x128xf32, #tpu.memory_space<vmem>>) attributes {dimension_semantics = [#tpu.dimension_semantics<parallel>, #tpu.dimension_semantics<arbitrary>], iteration_bounds = array<i64: 1, 1>, scalar_prefetch = 0 : i64, scratch_operands = 1 : i64, tpu.core_type = #tpu.core_type<tc>, window_params = [{transform_indices = @transform_0, window_bounds = array<i64: 2, 8, 128>}, {transform_indices = @transform_1, window_bounds = array<i64: 2, 1, 128>}]} {
    %c0_i32 = arith.constant 0 : i32
    %0 = arith.cmpi eq, %arg1, %c0_i32 : i32
    %1 = arith.extui %0 : i1 to i32
    %c0_i32_0 = arith.constant 0 : i32
    %2 = arith.cmpi ne, %1, %c0_i32_0 : i32
    scf.if %2 {
      %cst_11 = arith.constant 0.000000e+00 : f32
      %12 = vector.broadcast %cst_11 : f32 to vector<2x1x128xf32>
      %c0_12 = arith.constant 0 : index
      %c0_13 = arith.constant 0 : index
      %c0_14 = arith.constant 0 : index
      %13 = vector.load %arg4[%c0_12, %c0_13, %c0_14] : memref<2x1x128xf32, #tpu.memory_space<vmem>>, vector<2x1x128xf32>
      tpu.vector_store %arg4[%c0_12, %c0_13, %c0_14], %12 {strides = array<i32>} : memref<2x1x128xf32, #tpu.memory_space<vmem>>, vector<2x1x128xf32>,
    } else {
    }
    %c0 = arith.constant 0 : index
    %c0_1 = arith.constant 0 : index
    %c0_2 = arith.constant 0 : index
    %3 = vector.load %arg4[%c0, %c0_1, %c0_2] : memref<2x1x128xf32, #tpu.memory_space<vmem>>, vector<2x1x128xf32>
    %c0_3 = arith.constant 0 : index
    %c0_4 = arith.constant 0 : index
    %c0_5 = arith.constant 0 : index
    %4 = vector.load %arg2[%c0_3, %c0_4, %c0_5] : memref<2x8x128xf32, #tpu.memory_space<vmem>>, vector<2x8x128xf32>
    %cst = arith.constant dense<0.000000e+00> : vector<2x128xf32>
    %5 = vector.multi_reduction <add>, %4, %cst [1] : vector<2x8x128xf32> to vector<2x128xf32>
    %6 = vector.shape_cast %5 : vector<2x128xf32> to vector<2x1x128xf32>
    %7 = arith.addf %3, %6 : vector<2x1x128xf32>
    %c0_6 = arith.constant 0 : index
    %c0_7 = arith.constant 0 : index
    %c0_8 = arith.constant 0 : index
    %8 = vector.load %arg4[%c0_6, %c0_7, %c0_8] : memref<2x1x128xf32, #tpu.memory_space<vmem>>, vector<2x1x128xf32>
    tpu.vector_store %arg4[%c0_6, %c0_7, %c0_8], %7 {strides = array<i32>} : memref<2x1x128xf32, #tpu.memory_space<vmem>>, vector<2x1x128xf32>,
    %c0_i32_9 = arith.constant 0 : i32
    %9 = arith.cmpi eq, %arg1, %c0_i32_9 : i32
    %10 = arith.extui %9 : i1 to i32
    %c0_i32_10 = arith.constant 0 : i32
    %11 = arith.cmpi ne, %10, %c0_i32_10 : i32
    scf.if %11 {
      %c0_11 = arith.constant 0 : index
      %c0_12 = arith.constant 0 : index
      %c0_13 = arith.constant 0 : index
      %12 = vector.load %arg4[%c0_11, %c0_12, %c0_13] : memref<2x1x128xf32, #tpu.memory_space<vmem>>, vector<2x1x128xf32>
      %cst_14 = arith.constant 1.250000e-01 : f32
      %13 = vector.broadcast %cst_14 : f32 to vector<2x1x128xf32>
      %14 = arith.mulf %12, %13 : vector<2x1x128xf32>
      %c0_15 = arith.constant 0 : index
      %c0_16 = arith.constant 0 : index
      %c0_17 = arith.constant 0 : index
      %15 = vector.load %arg3[%c0_15, %c0_16, %c0_17] : memref<2x1x128xf32, #tpu.memory_space<vmem>>, vector<2x1x128xf32>
      tpu.vector_store %arg3[%c0_15, %c0_16, %c0_17], %14 {strides = array<i32>} : memref<2x1x128xf32, #tpu.memory_space<vmem>>, vector<2x1x128xf32>,
    } else {
    }
    return
  }
  func.func @transform_0(%arg0: i32, %arg1: i32) -> (i32, i32, i32) {
    %c0_i32 = arith.constant 0 : i32
    %c0_i32_0 = arith.constant 0 : i32
    return %arg0, %arg1, %c0_i32 : i32, i32, i32
  }
  func.func @transform_1(%arg0: i32, %arg1: i32) -> (i32, i32, i32) {
    %c0_i32 = arith.constant 0 : i32
    %c0_i32_0 = arith.constant 0 : i32
    %c0_i32_1 = arith.constant 0 : i32
    return %arg0, %c0_i32, %c0_i32_0 : i32, i32, i32
  }
}

</mosaic_0001>

<bundles_post_ra>
// kernel: tpu_custom_call.1
= control target key start
LH: loop header
LB: loop body
LE: loop exit
PB: predicated region body
PF: predicated region fallthrough
CT: control target
= control target key end

     0   :  { %6 = vsyncpa [#allocation4], 0  ;;  %s171_s0 = inlined_call_operand.hbm [shape: f32[2,8,128], index: 0, kind: input, shape index: {}]   ;;  %s172_s1 = inlined_call_operand.hbm [shape: f32[2,1,128], index: 1, kind: output, shape index: {}]  }
   0x1   :  { %7 = vsyncpa [#allocation5], 0  ;;  %s130_s6 = smov [#allocation3]   ;;  %s82_s10 = scalar_lea.hbm %s171_s0, 256 }
   0x2   :  { %s13_s7 = sshll.u32 %s130_s6, 4  ;;  %p83_p0 = scmp.ne.s32.totalorder %s171_s0, %s82_s10  ;;  %s14_s7 = int_to_ptr.vmem [resolvable:$true] %s13_s7 }
   0x3   :  { %p86_p1 = scmp.lt.u32.totalorder %s82_s10, %s171_s0 }
   0x5   :  { %p88_p2 = pnand %p86_p1, %p83_p0 }
   0x7   :  { %91 = shalt.err (!%p88_p2)
}
   0x8   :  { %s92_s15 = scalar_lea.vmem %s14_s7, 256  ;;  %p97_p4 = scmp.lt.s32.totalorder %s14_s7, %s14_s7 }
   0x9   :  { %p93_p3 = scmp.ne.s32.totalorder %s14_s7, %s92_s15  ;;  %p98_p5 = scmp.lt.s32.totalorder %s92_s15, %s92_s15 }
   0xb   :  { %p99_p6 = por %p98_p5, %p97_p4 }
   0xd   :  { %p100_p7 = pnand %p99_p6, %p93_p3 }
   0xf   :  { %103 = shalt.err (!%p100_p7)
}
  0x10   :  { %s131_s16 = smov 128   ;;  %s132_s17 = smov 8  }
  0x11   :  { %19 = dma.hbm_to_vmem [thread:$0]  %s171_s0, 256, %s14_s7, [#allocation4], %s131_s16, %s131_s16, %s132_s17  }
  0x12   :  { %126 = dma.done.wait [#allocation4], 256  }
  0x13   :  { %127 = vsyncadd [#allocation4], 4294967040  ;;  %v133_v0 = vmov 0.0   ;;  %v31_v1 = vld [vmem:[#allocation3] sm:$0xff]  ;;  %v32_v2 = vld [vmem:[#allocation3 + $0x8] sm:$0xff]  ;;  %s134_s0 = smov [#allocation6]  }
  0x14   :  { %27 = vst [vmem:[#allocation2] sm:$0x1] %v133_v0  ;;  %28 = vst [vmem:[#allocation2 + $0x1] sm:$0x1] %v133_v0  ;;  %v33_v3 = vrot.slane %v31_v1, 4  ;;  %v39_v4 = vrot.slane %v32_v2, 4 }
  0x15   :  { %s63_s20 = sshll.u32 %s134_s0, 4  ;;  %s64_s20 = int_to_ptr.vmem [resolvable:$true] %s63_s20 }
  0x16   :  { %v34_v5 = vadd.f32 %v33_v3, %v31_v1  ;;  %v40_v6 = vadd.f32 %v39_v4, %v32_v2  ;;  %s104_s21 = scalar_lea.vmem %s64_s20, 32  ;;  %p109_p9 = scmp.lt.s32.totalorder %s64_s20, %s64_s20 }
  0x17   :  { %p105_p8 = scmp.ne.s32.totalorder %s64_s20, %s104_s21  ;;  %p110_p10 = scmp.lt.s32.totalorder %s104_s21, %s104_s21 }
  0x18   :  { %v35_v7 = vrot.slane %v34_v5, 2  ;;  %v41_v8 = vrot.slane %v40_v6, 2 }
  0x19   :  { %p111_p11 = por %p110_p10, %p109_p9 }
  0x1a   :  { %v36_v9 = vadd.f32 %v35_v7, %v34_v5  ;;  %v42_v10 = vadd.f32 %v41_v8, %v40_v6 }
  0x1b   :  { %v29_v13 = vld [vmem:[#allocation2] sm:$0x1]  ;;  %v30_v14 = vld [vmem:[#allocation2 + $0x1] sm:$0x1]  ;;  %p112_p12 = pnand %p111_p11, %p105_p8 }
  0x1c   :  { %v37_v11 = vrot.slane %v36_v9, 1  ;;  %v43_v12 = vrot.slane %v42_v10, 1 }
  0x1e   :  { %v38_v15 = vadd.f32 %v37_v11, %v36_v9  ;;  %v44_v16 = vadd.f32 %v43_v12, %v42_v10 }
  0x20   :  { %v45_v17 = vadd.f32 %v38_v15, %v29_v13  ;;  %v46_v18 = vadd.f32 %v44_v16, %v30_v14 }
  0x22   :  { %47 = vst [vmem:[#allocation2] sm:$0x1] %v45_v17  ;;  %48 = vst [vmem:[#allocation2 + $0x1] sm:$0x1] %v46_v18 }
  0x29   :  { %v52_v19 = vld [vmem:[#allocation2] sm:$0x1]  ;;  %v53_v20 = vld [vmem:[#allocation2 + $0x1] sm:$0x1] }
  0x2a   :  { %v54_v21 = vmul.f32 0.125, %v52_v19  ;;  %v55_v22 = vmul.f32 0.125, %v53_v20 }
  0x2c   :  { %56 = vst [vmem:[#allocation6] sm:$0x1] %v54_v21  ;;  %57 = vst [vmem:[#allocation6 + $0x1] sm:$0x1] %v55_v22 }
  0x2d   :  { %115 = shalt.err (!%p112_p12)
}
  0x2e   :  { %s116_s24 = scalar_lea.hbm %s172_s1, 32 }
  0x2f   :  { %p117_p13 = scmp.ne.s32.totalorder %s172_s1, %s116_s24  ;;  %p120_p0 = scmp.lt.u32.totalorder %s116_s24, %s172_s1 }
  0x31   :  { %p122_p1 = pnand %p120_p0, %p117_p13 }
  0x33   :  { %125 = shalt.err (!%p122_p1)
}
  0x34   :  { %s135_s29 = smov 16   ;;  %s136_s30 = smov 1  }
  0x35   :  { %69 = dma.vmem_to_hbm [thread:$0]  %s64_s20, 32, %s172_s1, [#allocation5], %s135_s29, %s135_s29, %s136_s30  }
  0x36   :  { %128 = dma.done.wait [#allocation5], 32  }
  0x37   :  { %129 = vsyncadd [#allocation5], 4294967264 }
  0x38   :  { %73 = vsyncpa [#allocation4], 1 }
  0x39   :  { %74 = vsyncpa [#allocation5], 1 }

</bundles_post_ra>
